<compile_context>
chip_gen: v6e
topology: v6e:2x2x1
jax: 0.10.0
libtpu: 0.0.40
codegen_flags: <defaults>
</compile_context>

<pallas_src>
import functools

import jax
import jax.numpy as jnp
from jax.experimental import pallas as pl
from jax.experimental.pallas import tpu as pltpu

# Model dimensions (the original script's globals inputDim / hidden_layer_* /
# outputDim are not given, so we pick small consistent values).
INPUT_DIM = 16
HIDDEN_1 = 32
HIDDEN_2 = 64
HIDDEN_3 = 32
OUTPUT_DIM = 8
BN_EPS = 1e-5

LANES = 128      # every feature dim is zero-padded to one full lane group
SUBLANES = 8     # f32 sublane granularity

# Row offsets of the four (lane-padded) weight matrices inside the packed slab.
_W1_OFF = 0
_W2_OFF = _W1_OFF + INPUT_DIM      # W1 is [INPUT_DIM, LANES]
_W3_OFF = _W2_OFF + LANES          # W2, W3, W4 are [LANES, LANES]
_W4_OFF = _W3_OFF + LANES
_W_ROWS = _W4_OFF + LANES          # 400 rows (multiple of 8)

# Packed per-feature vector slab rows: b1,g1,be1, b2,g2,be2, b3,g3,be3, b4
_VEC_ROWS = 10
_VEC_ROWS_PAD = 16                 # padded to a sublane multiple

# bf16 MXU path for the four linears (stats / rsqrt / normalize stay f32).
# Recommended True for large, MXU-bound batches on v5e/v6e/v7x; kept False by
# default so the f32 reference check below stays tight.
USE_BF16_MATMUL = False


def _mlp_kernel(x_ref, w_ref, v_ref, o_ref, *, batch):
    """Fused 3x(Linear + BN(train) + ReLU) + Linear on a whole-batch-resident block."""
    b_pad = x_ref.shape[0]
    inv_n = jnp.float32(1.0 / batch)

    x = x_ref[...]                     # [B_pad, INPUT_DIM] f32
    vec = v_ref[...]                   # [16, 128] packed per-feature vectors

    b1, g1, be1 = vec[0:1, :], vec[1:2, :], vec[2:3, :]
    b2, g2, be2 = vec[3:4, :], vec[4:5, :], vec[5:6, :]
    b3, g3, be3 = vec[6:7, :], vec[7:8, :], vec[8:9, :]
    b4 = vec[9:10, :]

    w1 = w_ref[_W1_OFF:_W2_OFF, :]     # [16, 128]
    w2 = w_ref[_W2_OFF:_W3_OFF, :]     # [128, 128]
    w3 = w_ref[_W3_OFF:_W4_OFF, :]     # [128, 128]
    w4 = w_ref[_W4_OFF:_W_ROWS, :]     # [128, 128]

    # Column mask excludes zero-padded batch rows from the BN statistics.
    # Skipped at trace time when the batch is already sublane-aligned.
    if b_pad != batch:
        row_ids = jax.lax.broadcasted_iota(jnp.int32, (b_pad, 1), 0)
        mask_col = (row_ids < batch).astype(jnp.float32)     # [B_pad, 1]
    else:
        mask_col = None

    def linear(h, w, b):
        if USE_BF16_MATMUL:
            h = h.astype(jnp.bfloat16)
            w = w.astype(jnp.bfloat16)
        return jnp.dot(h, w, preferred_element_type=jnp.float32) + b

    def bn_relu(h, g, be):
        # Batch stats on the VPU/XLU (MXU stays free for the linears).
        hm = h if mask_col is None else h * mask_col
        mean = jnp.sum(hm, axis=0, keepdims=True) * inv_n                # [1,128]
        ex2 = jnp.sum(hm * h, axis=0, keepdims=True) * inv_n             # [1,128]
        var = jnp.maximum(ex2 - mean * mean, 0.0)                        # biased var
        # Fused normalize + affine: per-feature scale/shift, 3 VPU passes over h.
        scale = g * jax.lax.rsqrt(var + BN_EPS)                          # [1,128]
        shift = be - mean * scale                                        # [1,128]
        return jnp.maximum(h * scale + shift, 0.0)

    h = bn_relu(linear(x, w1, b1), g1, be1)
    h = bn_relu(linear(h, w2, b2), g2, be2)
    h = bn_relu(linear(h, w3, b3), g3, be3)
    y = linear(h, w4, b4)                                   # [B_pad, 128] f32
    # Narrow output store: only the real OUTPUT_DIM lanes go back to HBM.
    o_ref[...] = y[:, :OUTPUT_DIM].astype(o_ref.dtype)


def pack_params(params):
    """Pack the 14 small parameter tensors into two lane-dense f32 slabs (2 DMAs)."""
    def pad_w(w, rows):
        slab = jnp.zeros((rows, LANES), jnp.float32)
        return slab.at[: w.shape[0], : w.shape[1]].set(w.astype(jnp.float32))

    def pad_v(v):
        slab = jnp.zeros((1, LANES), jnp.float32)
        return slab.at[:, : v.shape[-1]].set(v.reshape(1, -1).astype(jnp.float32))

    w_slab = jnp.concatenate(
        [pad_w(params["w1"], INPUT_DIM),
         pad_w(params["w2"], LANES),
         pad_w(params["w3"], LANES),
         pad_w(params["w4"], LANES)], axis=0)              # [400, 128]

    vec_rows = [params["b1"], params["g1"], params["beta1"],
                params["b2"], params["g2"], params["beta2"],
                params["b3"], params["g3"], params["beta3"],
                params["b4"]]
    vec_slab = jnp.concatenate(
        [pad_v(v) for v in vec_rows]
        + [jnp.zeros((_VEC_ROWS_PAD - _VEC_ROWS, LANES), jnp.float32)],
        axis=0)                                            # [16, 128]
    return w_slab, vec_slab


def _vmem_limit_bytes(b_pad):
    """Per-generation VMEM budget (64 MiB/TC on v7x, 128 MiB on v5e/v6e)."""
    cap = 64 * 1024 * 1024                 # conservative fallback (v7x per-TC)
    try:
        info = pltpu.get_tpu_info()
        cap = int(getattr(info, "vmem_capacity_bytes", cap) or cap)
    except Exception:
        pass
    # Live set: x + packed weight/vector slabs + narrow output, plus roughly
    # 4 concurrent [B,128] f32 temps per BN layer (h, masked copy, products).
    need = 4 * (b_pad * INPUT_DIM + _W_ROWS * LANES + _VEC_ROWS_PAD * LANES
                + b_pad * OUTPUT_DIM) + 4 * 4 * b_pad * LANES
    return int(min(int(0.85 * cap), max(16 * 1024 * 1024, 2 * need)))


def network_forward(x, w_slab, vec_slab):
    """Fused forward pass.  x: [B, INPUT_DIM].  Returns [B, OUTPUT_DIM] float32."""
    batch = x.shape[0]
    # bf16 vregs are [16,128]; align the resident batch accordingly on that path.
    align = 16 if USE_BF16_MATMUL else SUBLANES
    b_pad = max(align, ((batch + align - 1) // align) * align)

    x = x.astype(jnp.float32)
    if b_pad != batch:
        x_in = jnp.zeros((b_pad, INPUT_DIM), jnp.float32).at[:batch].set(x)
    else:
        x_in = x                                          # no wrapper-side copy

    out = pl.pallas_call(
        functools.partial(_mlp_kernel, batch=batch),
        grid=(1,),
        in_specs=[
            pl.BlockSpec((b_pad, INPUT_DIM), lambda i: (0, 0)),
            pl.BlockSpec((_W_ROWS, LANES), lambda i: (0, 0)),
            pl.BlockSpec((_VEC_ROWS_PAD, LANES), lambda i: (0, 0)),
        ],
        out_specs=pl.BlockSpec((b_pad, OUTPUT_DIM), lambda i: (0, 0)),
        out_shape=jax.ShapeDtypeStruct((b_pad, OUTPUT_DIM), jnp.float32),
        compiler_params=pltpu.CompilerParams(
            vmem_limit_bytes=_vmem_limit_bytes(b_pad)),
    )(x_in, w_slab, vec_slab)

    return out if b_pad == batch else out[:batch]          # no slice on aligned B


def init_params(key):
    """Deterministic parameter init (PyTorch-like uniform +-1/sqrt(fan_in))."""
    def lin(key, fan_in, fan_out):
        kw, kb = jax.random.split(key)
        bound = 1.0 / jnp.sqrt(fan_in)
        w = jax.random.uniform(kw, (fan_in, fan_out), jnp.float32, -bound, bound)
        b = jax.random.uniform(kb, (1, fan_out), jnp.float32, -bound, bound)
        return w, b

    k1, k2, k3, k4, k5 = jax.random.split(key, 5)
    w1, b1 = lin(k1, INPUT_DIM, HIDDEN_1)
    w2, b2 = lin(k2, HIDDEN_1, HIDDEN_2)
    w3, b3 = lin(k3, HIDDEN_2, HIDDEN_3)
    w4, b4 = lin(k4, HIDDEN_3, OUTPUT_DIM)
    kg1, kg2, kg3 = jax.random.split(k5, 3)
    g1 = 1.0 + 0.1 * jax.random.normal(kg1, (1, HIDDEN_1), jnp.float32)
    g2 = 1.0 + 0.1 * jax.random.normal(kg2, (1, HIDDEN_2), jnp.float32)
    g3 = 1.0 + 0.1 * jax.random.normal(kg3, (1, HIDDEN_3), jnp.float32)
    beta1 = jnp.zeros((1, HIDDEN_1), jnp.float32)
    beta2 = jnp.zeros((1, HIDDEN_2), jnp.float32)
    beta3 = jnp.zeros((1, HIDDEN_3), jnp.float32)
    return dict(w1=w1, b1=b1, g1=g1, beta1=beta1,
                w2=w2, b2=b2, g2=g2, beta2=beta2,
                w3=w3, b3=b3, g3=g3, beta3=beta3,
                w4=w4, b4=b4)


def _reference_forward(x, p):
    """Pure-JAX reference (matches PyTorch training-mode forward)."""
    def bn_relu(h, g, b):
        mean = jnp.mean(h, axis=0, keepdims=True)
        var = jnp.mean((h - mean) ** 2, axis=0, keepdims=True)
        return jnp.maximum((h - mean) / jnp.sqrt(var + BN_EPS) * g + b, 0.0)
    h = x @ p["w1"] + p["b1"]; h = bn_relu(h, p["g1"], p["beta1"])
    h = h @ p["w2"] + p["b2"]; h = bn_relu(h, p["g2"], p["beta2"])
    h = h @ p["w3"] + p["b3"]; h = bn_relu(h, p["g3"], p["beta3"])
    return h @ p["w4"] + p["b4"]


if __name__ == "__main__":
    key = jax.random.PRNGKey(0)
    kx, kp = jax.random.split(key)
    batch = 64   # sublane-aligned -> pad/slice-free fast path; BN stats over full batch
    x = jax.random.normal(kx, (batch, INPUT_DIM), jnp.float32)
    params = init_params(kp)
    w_slab, vec_slab = pack_params(params)

    out = network_forward(x, w_slab, vec_slab)
    out = jax.block_until_ready(out)

    ref = _reference_forward(x, params)
    tol = 5e-4 if not USE_BF16_MATMUL else 3e-2   # bf16 MXU path changes numerics
    assert out.shape == (batch, OUTPUT_DIM)
    assert jnp.allclose(out, ref, atol=tol, rtol=tol), "mismatch vs reference"
    print("KERNEL_OK")
</pallas_src>

<mosaic_0001>
module attributes {stable_mosaic.version = 11 : i64} {
  func.func @_mlp_kernel(%arg0: i32, %arg1: memref<64x16xf32, #tpu.memory_space<vmem>>, %arg2: memref<400x128xf32, #tpu.memory_space<vmem>>, %arg3: memref<16x128xf32, #tpu.memory_space<vmem>>, %arg4: memref<64x8xf32, #tpu.memory_space<vmem>>) attributes {dimension_semantics = [#tpu.dimension_semantics<arbitrary>], iteration_bounds = array<i64: 1>, scalar_prefetch = 0 : i64, scratch_operands = 0 : i64, tpu.core_type = #tpu.core_type<tc>, window_params = [{pipeline_mode = #tpu.pipeline_mode<synchronous>, transform_indices = @transform_0, window_bounds = array<i64: 64, 16>}, {pipeline_mode = #tpu.pipeline_mode<synchronous>, transform_indices = @transform_1, window_bounds = array<i64: 400, 128>}, {pipeline_mode = #tpu.pipeline_mode<synchronous>, transform_indices = @transform_2, window_bounds = array<i64: 16, 128>}, {pipeline_mode = #tpu.pipeline_mode<synchronous>, transform_indices = @transform_3, window_bounds = array<i64: 64, 8>}]} {
    %c0 = arith.constant 0 : index
    %c0_0 = arith.constant 0 : index
    %0 = vector.load %arg1[%c0, %c0_0] : memref<64x16xf32, #tpu.memory_space<vmem>>, vector<64x16xf32>
    %c0_1 = arith.constant 0 : index
    %c0_2 = arith.constant 0 : index
    %1 = vector.load %arg3[%c0_1, %c0_2] : memref<16x128xf32, #tpu.memory_space<vmem>>, vector<16x128xf32>
    %2 = vector.extract_strided_slice %1 {offsets = [0, 0], sizes = [1, 128], strides = [1, 1]} : vector<16x128xf32> to vector<1x128xf32>
    %3 = vector.extract_strided_slice %1 {offsets = [1, 0], sizes = [1, 128], strides = [1, 1]} : vector<16x128xf32> to vector<1x128xf32>
    %4 = vector.extract_strided_slice %1 {offsets = [2, 0], sizes = [1, 128], strides = [1, 1]} : vector<16x128xf32> to vector<1x128xf32>
    %5 = vector.extract_strided_slice %1 {offsets = [3, 0], sizes = [1, 128], strides = [1, 1]} : vector<16x128xf32> to vector<1x128xf32>
    %6 = vector.extract_strided_slice %1 {offsets = [4, 0], sizes = [1, 128], strides = [1, 1]} : vector<16x128xf32> to vector<1x128xf32>
    %7 = vector.extract_strided_slice %1 {offsets = [5, 0], sizes = [1, 128], strides = [1, 1]} : vector<16x128xf32> to vector<1x128xf32>
    %8 = vector.extract_strided_slice %1 {offsets = [6, 0], sizes = [1, 128], strides = [1, 1]} : vector<16x128xf32> to vector<1x128xf32>
    %9 = vector.extract_strided_slice %1 {offsets = [7, 0], sizes = [1, 128], strides = [1, 1]} : vector<16x128xf32> to vector<1x128xf32>
    %10 = vector.extract_strided_slice %1 {offsets = [8, 0], sizes = [1, 128], strides = [1, 1]} : vector<16x128xf32> to vector<1x128xf32>
    %11 = vector.extract_strided_slice %1 {offsets = [9, 0], sizes = [1, 128], strides = [1, 1]} : vector<16x128xf32> to vector<1x128xf32>
    %c0_3 = arith.constant 0 : index
    %c0_4 = arith.constant 0 : index
    %12 = vector.load %arg2[%c0_3, %c0_4] : memref<400x128xf32, #tpu.memory_space<vmem>>, vector<16x128xf32>
    %c16 = arith.constant 16 : index
    %c0_5 = arith.constant 0 : index
    %13 = vector.load %arg2[%c16, %c0_5] : memref<400x128xf32, #tpu.memory_space<vmem>>, vector<128x128xf32>
    %c144 = arith.constant 144 : index
    %c0_6 = arith.constant 0 : index
    %14 = vector.load %arg2[%c144, %c0_6] : memref<400x128xf32, #tpu.memory_space<vmem>>, vector<128x128xf32>
    %c272 = arith.constant 272 : index
    %c0_7 = arith.constant 0 : index
    %15 = vector.load %arg2[%c272, %c0_7] : memref<400x128xf32, #tpu.memory_space<vmem>>, vector<128x128xf32>
    %cst = arith.constant dense<0.000000e+00> : vector<64x128xf32>
    %16 = tpu.matmul %0, %12, %cst {dimension_numbers = #tpu.dot_dimension_numbers<[1], [0], [0], [1], [0, 0, 1, 1], [], []>} : vector<64x16xf32>, vector<16x128xf32>, vector<64x128xf32> -> vector<64x128xf32>
    %17 = vector.broadcast %2 : vector<1x128xf32> to vector<64x128xf32>
    %18 = arith.addf %16, %17 : vector<64x128xf32>
    %cst_8 = arith.constant dense<0.000000e+00> : vector<128xf32>
    %19 = vector.multi_reduction <add>, %18, %cst_8 [0] : vector<64x128xf32> to vector<128xf32>
    %20 = vector.shape_cast %19 : vector<128xf32> to vector<1x128xf32>
    %cst_9 = arith.constant 1.562500e-02 : f32
    %21 = vector.broadcast %cst_9 : f32 to vector<1x128xf32>
    %22 = arith.mulf %20, %21 : vector<1x128xf32>
    %23 = arith.mulf %18, %18 : vector<64x128xf32>
    %cst_10 = arith.constant dense<0.000000e+00> : vector<128xf32>
    %24 = vector.multi_reduction <add>, %23, %cst_10 [0] : vector<64x128xf32> to vector<128xf32>
    %25 = vector.shape_cast %24 : vector<128xf32> to vector<1x128xf32>
    %cst_11 = arith.constant 1.562500e-02 : f32
    %26 = vector.broadcast %cst_11 : f32 to vector<1x128xf32>
    %27 = arith.mulf %25, %26 : vector<1x128xf32>
    %28 = arith.mulf %22, %22 : vector<1x128xf32>
    %29 = arith.subf %27, %28 : vector<1x128xf32>
    %cst_12 = arith.constant 0.000000e+00 : f32
    %30 = vector.broadcast %cst_12 : f32 to vector<1x128xf32>
    %31 = arith.maximumf %29, %30 : vector<1x128xf32>
    %cst_13 = arith.constant 9.99999974E-6 : f32
    %32 = vector.broadcast %cst_13 : f32 to vector<1x128xf32>
    %33 = arith.addf %31, %32 : vector<1x128xf32>
    %34 = math.rsqrt %33 : vector<1x128xf32>
    %35 = arith.mulf %3, %34 : vector<1x128xf32>
    %36 = arith.mulf %22, %35 : vector<1x128xf32>
    %37 = arith.subf %4, %36 : vector<1x128xf32>
    %38 = vector.broadcast %35 : vector<1x128xf32> to vector<64x128xf32>
    %39 = arith.mulf %18, %38 : vector<64x128xf32>
    %40 = vector.broadcast %37 : vector<1x128xf32> to vector<64x128xf32>
    %41 = arith.addf %39, %40 : vector<64x128xf32>
    %cst_14 = arith.constant 0.000000e+00 : f32
    %42 = vector.broadcast %cst_14 : f32 to vector<64x128xf32>
    %43 = arith.maximumf %41, %42 : vector<64x128xf32>
    %cst_15 = arith.constant dense<0.000000e+00> : vector<64x128xf32>
    %44 = tpu.matmul %43, %13, %cst_15 {dimension_numbers = #tpu.dot_dimension_numbers<[1], [0], [0], [1], [0, 0, 1, 1], [], []>} : vector<64x128xf32>, vector<128x128xf32>, vector<64x128xf32> -> vector<64x128xf32>
    %45 = vector.broadcast %5 : vector<1x128xf32> to vector<64x128xf32>
    %46 = arith.addf %44, %45 : vector<64x128xf32>
    %cst_16 = arith.constant dense<0.000000e+00> : vector<128xf32>
    %47 = vector.multi_reduction <add>, %46, %cst_16 [0] : vector<64x128xf32> to vector<128xf32>
    %48 = vector.shape_cast %47 : vector<128xf32> to vector<1x128xf32>
    %cst_17 = arith.constant 1.562500e-02 : f32
    %49 = vector.broadcast %cst_17 : f32 to vector<1x128xf32>
    %50 = arith.mulf %48, %49 : vector<1x128xf32>
    %51 = arith.mulf %46, %46 : vector<64x128xf32>
    %cst_18 = arith.constant dense<0.000000e+00> : vector<128xf32>
    %52 = vector.multi_reduction <add>, %51, %cst_18 [0] : vector<64x128xf32> to vector<128xf32>
    %53 = vector.shape_cast %52 : vector<128xf32> to vector<1x128xf32>
    %cst_19 = arith.constant 1.562500e-02 : f32
    %54 = vector.broadcast %cst_19 : f32 to vector<1x128xf32>
    %55 = arith.mulf %53, %54 : vector<1x128xf32>
    %56 = arith.mulf %50, %50 : vector<1x128xf32>
    %57 = arith.subf %55, %56 : vector<1x128xf32>
    %cst_20 = arith.constant 0.000000e+00 : f32
    %58 = vector.broadcast %cst_20 : f32 to vector<1x128xf32>
    %59 = arith.maximumf %57, %58 : vector<1x128xf32>
    %cst_21 = arith.constant 9.99999974E-6 : f32
    %60 = vector.broadcast %cst_21 : f32 to vector<1x128xf32>
    %61 = arith.addf %59, %60 : vector<1x128xf32>
    %62 = math.rsqrt %61 : vector<1x128xf32>
    %63 = arith.mulf %6, %62 : vector<1x128xf32>
    %64 = arith.mulf %50, %63 : vector<1x128xf32>
    %65 = arith.subf %7, %64 : vector<1x128xf32>
    %66 = vector.broadcast %63 : vector<1x128xf32> to vector<64x128xf32>
    %67 = arith.mulf %46, %66 : vector<64x128xf32>
    %68 = vector.broadcast %65 : vector<1x128xf32> to vector<64x128xf32>
    %69 = arith.addf %67, %68 : vector<64x128xf32>
    %cst_22 = arith.constant 0.000000e+00 : f32
    %70 = vector.broadcast %cst_22 : f32 to vector<64x128xf32>
    %71 = arith.maximumf %69, %70 : vector<64x128xf32>
    %cst_23 = arith.constant dense<0.000000e+00> : vector<64x128xf32>
    %72 = tpu.matmul %71, %14, %cst_23 {dimension_numbers = #tpu.dot_dimension_numbers<[1], [0], [0], [1], [0, 0, 1, 1], [], []>} : vector<64x128xf32>, vector<128x128xf32>, vector<64x128xf32> -> vector<64x128xf32>
    %73 = vector.broadcast %8 : vector<1x128xf32> to vector<64x128xf32>
    %74 = arith.addf %72, %73 : vector<64x128xf32>
    %cst_24 = arith.constant dense<0.000000e+00> : vector<128xf32>
    %75 = vector.multi_reduction <add>, %74, %cst_24 [0] : vector<64x128xf32> to vector<128xf32>
    %76 = vector.shape_cast %75 : vector<128xf32> to vector<1x128xf32>
    %cst_25 = arith.constant 1.562500e-02 : f32
    %77 = vector.broadcast %cst_25 : f32 to vector<1x128xf32>
    %78 = arith.mulf %76, %77 : vector<1x128xf32>
    %79 = arith.mulf %74, %74 : vector<64x128xf32>
    %cst_26 = arith.constant dense<0.000000e+00> : vector<128xf32>
    %80 = vector.multi_reduction <add>, %79, %cst_26 [0] : vector<64x128xf32> to vector<128xf32>
    %81 = vector.shape_cast %80 : vector<128xf32> to vector<1x128xf32>
    %cst_27 = arith.constant 1.562500e-02 : f32
    %82 = vector.broadcast %cst_27 : f32 to vector<1x128xf32>
    %83 = arith.mulf %81, %82 : vector<1x128xf32>
    %84 = arith.mulf %78, %78 : vector<1x128xf32>
    %85 = arith.subf %83, %84 : vector<1x128xf32>
    %cst_28 = arith.constant 0.000000e+00 : f32
    %86 = vector.broadcast %cst_28 : f32 to vector<1x128xf32>
    %87 = arith.maximumf %85, %86 : vector<1x128xf32>
    %cst_29 = arith.constant 9.99999974E-6 : f32
    %88 = vector.broadcast %cst_29 : f32 to vector<1x128xf32>
    %89 = arith.addf %87, %88 : vector<1x128xf32>
    %90 = math.rsqrt %89 : vector<1x128xf32>
    %91 = arith.mulf %9, %90 : vector<1x128xf32>
    %92 = arith.mulf %78, %91 : vector<1x128xf32>
    %93 = arith.subf %10, %92 : vector<1x128xf32>
    %94 = vector.broadcast %91 : vector<1x128xf32> to vector<64x128xf32>
    %95 = arith.mulf %74, %94 : vector<64x128xf32>
    %96 = vector.broadcast %93 : vector<1x128xf32> to vector<64x128xf32>
    %97 = arith.addf %95, %96 : vector<64x128xf32>
    %cst_30 = arith.constant 0.000000e+00 : f32
    %98 = vector.broadcast %cst_30 : f32 to vector<64x128xf32>
    %99 = arith.maximumf %97, %98 : vector<64x128xf32>
    %cst_31 = arith.constant dense<0.000000e+00> : vector<64x128xf32>
    %100 = tpu.matmul %99, %15, %cst_31 {dimension_numbers = #tpu.dot_dimension_numbers<[1], [0], [0], [1], [0, 0, 1, 1], [], []>} : vector<64x128xf32>, vector<128x128xf32>, vector<64x128xf32> -> vector<64x128xf32>
    %101 = vector.broadcast %11 : vector<1x128xf32> to vector<64x128xf32>
    %102 = arith.addf %100, %101 : vector<64x128xf32>
    %103 = vector.extract_strided_slice %102 {offsets = [0, 0], sizes = [64, 8], strides = [1, 1]} : vector<64x128xf32> to vector<64x8xf32>
    %c0_32 = arith.constant 0 : index
    %c0_33 = arith.constant 0 : index
    %104 = vector.load %arg4[%c0_32, %c0_33] : memref<64x8xf32, #tpu.memory_space<vmem>>, vector<64x8xf32>
    tpu.vector_store %arg4[%c0_32, %c0_33], %103 {strides = array<i32>} : memref<64x8xf32, #tpu.memory_space<vmem>>, vector<64x8xf32>,
    return
  }
  func.func @transform_0(%arg0: i32) -> (i32, i32) {
    %c0_i32 = arith.constant 0 : i32
    %c0_i32_0 = arith.constant 0 : i32
    %c0_i32_1 = arith.constant 0 : i32
    return %c0_i32, %c0_i32_0 : i32, i32
  }
  func.func @transform_1(%arg0: i32) -> (i32, i32) {
    %c0_i32 = arith.constant 0 : i32
    %c0_i32_0 = arith.constant 0 : i32
    %c0_i32_1 = arith.constant 0 : i32
    return %c0_i32, %c0_i32_0 : i32, i32
  }
  func.func @transform_2(%arg0: i32) -> (i32, i32) {
    %c0_i32 = arith.constant 0 : i32
    %c0_i32_0 = arith.constant 0 : i32
    %c0_i32_1 = arith.constant 0 : i32
    return %c0_i32, %c0_i32_0 : i32, i32
  }
  func.func @transform_3(%arg0: i32) -> (i32, i32) {
    %c0_i32 = arith.constant 0 : i32
    %c0_i32_0 = arith.constant 0 : i32
    %c0_i32_1 = arith.constant 0 : i32
    return %c0_i32, %c0_i32_0 : i32, i32
  }
}

</mosaic_0001>

<bundles_post_ra>
// kernel: tpu_custom_call.1
= control target key start
LH: loop header
LB: loop body
LE: loop exit
PB: predicated region body
PF: predicated region fallthrough
CT: control target
= control target key end

     0   :  { %8 = vsyncpa [#allocation3], 0  ;;  %s1101_s12 = smov [#allocation2]   ;;  %s1279_s0 = inlined_call_operand.vmem [shape: f32[64,16], index: 0, kind: input, shape index: {}]   ;;  %s1280_s1 = inlined_call_operand.hbm [shape: f32[400,128], index: 1, kind: input, shape index: {}]   ;;  %s1281_s2 = inlined_call_operand.vmem [shape: f32[16,128], index: 2, kind: input, shape index: {}]   ;;  %s1282_s3 = inlined_call_operand.vmem [shape: f32[64,8], index: 3, kind: output, shape index: {}]  }
   0x1   :  { %s16_s13 = sshll.u32 %s1101_s12, 4  ;;  %s17_s13 = int_to_ptr.vmem [resolvable:$true] %s16_s13 }
   0x2   :  { %s1087_s14 = scalar_lea.vmem %s17_s13, 6400  ;;  %p1092_p1 = scmp.lt.s32.totalorder %s17_s13, %s17_s13 }
   0x3   :  { %p1088_p0 = scmp.ne.s32.totalorder %s17_s13, %s1087_s14  ;;  %p1093_p2 = scmp.lt.s32.totalorder %s1087_s14, %s1087_s14 }
   0x5   :  { %p1094_p3 = por %p1093_p2, %p1092_p1 }
   0x7   :  { %p1095_p4 = pnand %p1094_p3, %p1088_p0 }
   0x9   :  { %1098 = shalt.err (!%p1095_p4)
}
   0xa   :  { %s1102_s15 = smov 128   ;;  %s1103_s16 = smov 8  }
   0xb   :  { %22 = dma.hbm_to_vmem [thread:$0]  %s1280_s1, 6400, %s17_s13, [#allocation3], %s1102_s15, %s1102_s15, %s1103_s16  }
   0xc   :  { %1099 = dma.done.wait [#allocation3], 6400  }
   0xd   :  { %1100 = vsyncadd [#allocation3], 4294960896  ;;  %vm92_vm0 = vcmask 130048   ;;  %v39_v0 = vld [vmem:[#allocation2 + $0x8] sm:$0xff]  ;;  %v38_v1 = vld [vmem:[#allocation2] sm:$0xff]  ;;  %v88_v26 = vlaneseq  ;;  %vm786_vm1 = vcmask 64512  }
   0xe   :  { %v28_v2 = vld [vmem:[%s1279_s0] sm:$0xff]  ;;  %890 = vmatprep.subr.mxu0 %v39_v0  ;;  %v29_v3 = vld [vmem:[%s1279_s0 + $0x8] sm:$0xff]  ;;  %v30_v4 = vld [vmem:[%s1279_s0 + $0x10] sm:$0xff] }
   0xf   :  { %894 = vmatprep.mubr.msk.f32.mxu0 %vm92_vm0, %v28_v2  ;;  %891 = vmatpush3.msra.mxu0 %v39_v0  ;;  %v31_v5 = vld [vmem:[%s1279_s0 + $0x18] sm:$0xff]  ;;  %v32_v6 = vld [vmem:[%s1279_s0 + $0x20] sm:$0xff]  ;;  %v33_v7 = vld [vmem:[%s1279_s0 + $0x28] sm:$0xff]  ;;  %v1159_v27 = vshrl.u32 %v88_v26, 7 }
  0x10   :  { %892 = vmatprep.subr.mxu0 %v38_v1  ;;  %v34_v8 = vld [vmem:[%s1279_s0 + $0x30] sm:$0xff]  ;;  %v35_v9 = vld [vmem:[%s1279_s0 + $0x38] sm:$0xff]  ;;  %v55_v10 = vld [vmem:[#allocation2 + $0x88] sm:$0xff] }
  0x11   :  { %893 = vmatpush3.msra.mxu0 %v38_v1  ;;  %906 = vmatprep.subr.mxu1 %v55_v10  ;;  %v54_v11 = vld [vmem:[#allocation2 + $0x80] sm:$0xff]  ;;  %v53_v12 = vld [vmem:[#allocation2 + $0x78] sm:$0xff]  ;;  %v52_v13 = vld [vmem:[#allocation2 + $0x70] sm:$0xff]  ;;  %v90_v28 = vsub.s32 0, %v1159_v27 }
  0x12   :  { %895 = vmatmul.mubr.msk.f32.vlgmr.msra.gmra.mxu0 %vm92_vm0, %v29_v3  ;;  %907 = vmatpush3.msra.mxu1 %v55_v10  ;;  %v51_v14 = vld [vmem:[#allocation2 + $0x68] sm:$0xff]  ;;  %v50_v15 = vld [vmem:[#allocation2 + $0x60] sm:$0xff]  ;;  %v49_v16 = vld [vmem:[#allocation2 + $0x58] sm:$0xff] }
  0x13   :  { %897 = vmatprep.mubr.msk.f32.mxu0 %vm92_vm0, %v30_v4  ;;  %908 = vmatprep.subr.mxu1 %v54_v11  ;;  %v48_v17 = vld [vmem:[#allocation2 + $0x50] sm:$0xff]  ;;  %v47_v18 = vld [vmem:[#allocation2 + $0x48] sm:$0xff]  ;;  %v46_v19 = vld [vmem:[#allocation2 + $0x40] sm:$0xff] }
  0x14   :  { %909 = vmatpush3.msra.mxu1 %v54_v11  ;;  %v45_v20 = vld [vmem:[#allocation2 + $0x38] sm:$0xff]  ;;  %v44_v21 = vld [vmem:[#allocation2 + $0x30] sm:$0xff]  ;;  %v43_v22 = vld [vmem:[#allocation2 + $0x28] sm:$0xff] }
  0x15   :  { %910 = vmatprep.subr.mxu1 %v53_v12  ;;  %v42_v23 = vld [vmem:[#allocation2 + $0x20] sm:$0xff]  ;;  %v41_v24 = vld [vmem:[#allocation2 + $0x18] sm:$0xff]  ;;  %v40_v25 = vld [vmem:[#allocation2 + $0x10] sm:$0xff] }
  0x16   :  { %898 = vmatmul.mubr.msk.f32.gmra.mxu0 %vm92_vm0, %v31_v5  ;;  %911 = vmatpush3.msra.mxu1 %v53_v12  ;;  %v1165_v29 = vld [vmem:[%s1281_s2] sm:$0xff] }
  0x17   :  { %900 = vmatprep.mubr.msk.f32.mxu0 %vm92_vm0, %v32_v6  ;;  %912 = vmatprep.subr.mxu1 %v52_v13  ;;  %v91_v30 = vrot.slane %v1165_v29, %v90_v28 }
  0x18   :  { %913 = vmatpush3.msra.mxu1 %v52_v13 }
  0x19   :  { %914 = vmatprep.subr.mxu1 %v51_v14 }
  0x1a   :  { %901 = vmatmul.mubr.msk.f32.gmra.mxu0 %vm92_vm0, %v33_v7  ;;  %915 = vmatpush3.msra.mxu1 %v51_v14 }
  0x1b   :  { %903 = vmatprep.mubr.msk.f32.mxu0 %vm92_vm0, %v34_v8  ;;  %916 = vmatprep.subr.mxu1 %v50_v15 }
  0x1c   :  { %917 = vmatpush3.msra.mxu1 %v50_v15 }
  0x1d   :  { %918 = vmatprep.subr.mxu1 %v49_v16 }
  0x1e   :  { %904 = vmatmul.mubr.msk.f32.gmra.mxu0 %vm92_vm0, %v35_v9  ;;  %919 = vmatpush3.msra.mxu1 %v49_v16 }
  0x1f   :  { %920 = vmatprep.subr.mxu1 %v48_v17 }
  0x20   :  { %921 = vmatpush3.msra.mxu1 %v48_v17 }
  0x21   :  { %922 = vmatprep.subr.mxu1 %v47_v18 }
  0x22   :  { %923 = vmatpush3.msra.mxu1 %v47_v18 }
  0x23   :  { %924 = vmatprep.subr.mxu1 %v46_v19 }
  0x24   :  { %925 = vmatpush3.msra.mxu1 %v46_v19 }
  0x25   :  { %926 = vmatprep.subr.mxu1 %v45_v20 }
  0x26   :  { %927 = vmatpush3.msra.mxu1 %v45_v20 }
  0x27   :  { %928 = vmatprep.subr.mxu1 %v44_v21 }
  0x28   :  { %929 = vmatpush3.msra.mxu1 %v44_v21 }
  0x29   :  { %930 = vmatprep.subr.mxu1 %v43_v22 }
  0x2a   :  { %931 = vmatpush3.msra.mxu1 %v43_v22 }
  0x2b   :  { %932 = vmatprep.subr.mxu1 %v42_v23 }
  0x2c   :  { %933 = vmatpush3.msra.mxu1 %v42_v23 }
  0x2d   :  { %934 = vmatprep.subr.mxu1 %v41_v24 }
  0x2e   :  { %935 = vmatpush3.msra.mxu1 %v41_v24 }
  0x2f   :  { %936 = vmatprep.subr.mxu1 %v40_v25 }
  0x30   :  { %937 = vmatpush3.msra.mxu1 %v40_v25  ;;  %v271_v25 = vsub.s32 1, %v1159_v27 }
  0xd2   :  { %v896_v31 = vpop.f32.mrf.mxu0 }
  0xd3   :  { %v1170_v33 = vadd.f32 %v896_v31, %v91_v30 }
  0xd4   :  { %v183_v32 = vpop.f32.mrf.mxu0 }
  0xd5   :  { %v1172_v34 = vadd.f32 %v183_v32, %v91_v30  ;;  %v237_v38 = vmul.f32 %v1170_v33, %v1170_v33  ;;  %v283_v32 = vsub.s32 2, %v1159_v27 }
  0xd6   :  { %v899_v35 = vpop.f32.mrf.mxu0 }
  0xd7   :  { %v236_v36 = vmul.f32 %v1172_v34, %v1172_v34  ;;  %v222_v39 = vadd.f32 %v1170_v33, %v1172_v34  ;;  %v1180_v40 = vadd.f32 %v899_v35, %v91_v30 }
  0xd8   :  { %v193_v37 = vpop.f32.mrf.mxu0 }
  0xd9   :  { %v194_v41 = vadd.f32 %v193_v37, %v91_v30  ;;  %v244_v43 = vadd.f32 %v237_v38, %v236_v36  ;;  %v239_v48 = vmul.f32 %v1180_v40, %v1180_v40 }
  0xda   :  { %v902_v42 = vpop.f32.mrf.mxu0 }
  0xdb   :  { %v223_v44 = vadd.f32 %v222_v39, %v194_v41  ;;  %v238_v45 = vmul.f32 %v194_v41, %v194_v41  ;;  %v1182_v46 = vadd.f32 %v902_v42, %v91_v30 }
  0xdc   :  { %v203_v47 = vpop.f32.mrf.mxu0 }
  0xdd   :  { %v245_v49 = vadd.f32 %v244_v43, %v238_v45  ;;  %v204_v50 = vadd.f32 %v203_v47, %v91_v30  ;;  %v224_v51 = vadd.f32 %v223_v44, %v1180_v40  ;;  %v241_v56 = vmul.f32 %v1182_v46, %v1182_v46 }
  0xde   :  { %v905_v52 = vpop.f32.mrf.mxu0 }
  0xdf   :  { %v225_v53 = vadd.f32 %v224_v51, %v204_v50  ;;  %v240_v54 = vmul.f32 %v204_v50, %v204_v50  ;;  %v246_v55 = vadd.f32 %v245_v49, %v239_v48  ;;  %v219_v59 = vadd.f32 %v905_v52, %v91_v30 }
  0xe0   :  { %v213_v57 = vpop.f32.mrf.mxu0 }
  0xe1   :  { %v247_v58 = vadd.f32 %v246_v55, %v240_v54  ;;  %v214_v60 = vadd.f32 %v213_v57, %v91_v30  ;;  %v226_v61 = vadd.f32 %v225_v53, %v1182_v46  ;;  %v243_v1 = vmul.f32 %v219_v59, %v219_v59 }
  0xe3   :  { %v227_v62 = vadd.f32 %v226_v61, %v214_v60  ;;  %v242_v63 = vmul.f32 %v214_v60, %v214_v60  ;;  %v248_v0 = vadd.f32 %v247_v58, %v241_v56 }
  0xe5   :  { %v228_v2 = vadd.f32 %v227_v62, %v219_v59  ;;  %v249_v3 = vadd.f32 %v248_v0, %v242_v63  ;;  %v71_v62 = vld [vmem:[#allocation2 + $0x108] sm:$0xff]  ;;  %v68_v63 = vld [vmem:[#allocation2 + $0xf0] sm:$0xff]  ;;  %v66_v0 = vld [vmem:[#allocation2 + $0xe0] sm:$0xff] }
  0xe6   :  { %950 = vmatprep.subr.mxu0 %v71_v62 }
  0xe7   :  { %v229_v4 = vrot.slane %v228_v2, 4  ;;  %v250_v5 = vadd.f32 %v249_v3, %v243_v1  ;;  %951 = vmatpush3.msra.mxu0 %v71_v62  ;;  %v65_v1 = vld [vmem:[#allocation2 + $0xd8] sm:$0xff]  ;;  %v63_v3 = vld [vmem:[#allocation2 + $0xc8] sm:$0xff] }
  0xe9   :  { %v230_v6 = vadd.f32 %v229_v4, %v228_v2  ;;  %v251_v7 = vrot.slane %v250_v5, 4  ;;  %v64_v2 = vld [vmem:[#allocation2 + $0xd0] sm:$0xff]  ;;  %v62_v4 = vld [vmem:[#allocation2 + $0xc0] sm:$0xff] }
  0xeb   :  { %v231_v8 = vrot.slane %v230_v6, 2  ;;  %v252_v9 = vadd.f32 %v251_v7, %v250_v5  ;;  %v61_v5 = vld [vmem:[#allocation2 + $0xb8] sm:$0xff]  ;;  %v59_v7 = vld [vmem:[#allocation2 + $0xa8] sm:$0xff] }
  0xed   :  { %v232_v10 = vadd.f32 %v231_v8, %v230_v6  ;;  %v253_v11 = vrot.slane %v252_v9, 2  ;;  %v60_v6 = vld [vmem:[#allocation2 + $0xb0] sm:$0xff]  ;;  %v58_v8 = vld [vmem:[#allocation2 + $0xa0] sm:$0xff] }
  0xef   :  { %v233_v12 = vrot.slane %v232_v10, 1  ;;  %v254_v13 = vadd.f32 %v253_v11, %v252_v9  ;;  %v57_v9 = vld [vmem:[#allocation2 + $0x98] sm:$0xff]  ;;  %v303_v11 = vsub.s32 3, %v1159_v27 }
  0xf1   :  { %v234_v14 = vadd.f32 %v233_v12, %v232_v10  ;;  %v255_v15 = vrot.slane %v254_v13, 1  ;;  %v56_v10 = vld [vmem:[#allocation2 + $0x90] sm:$0xff]  ;;  %v304_v12 = vrot.slane %v1165_v29, %v303_v11  ;;  %v459_v11 = vsub.s32 4, %v1159_v27 }
  0xf3   :  { %v235_v16 = vmul.f32 0.015625, %v234_v14  ;;  %v256_v17 = vadd.f32 %v255_v15, %v254_v13 }
  0xf5   :  { %v257_v18 = vmul.f32 0.015625, %v256_v17  ;;  %v258_v19 = vmul.f32 %v235_v16, %v235_v16 }
  0xf7   :  { %v259_v20 = vsub.f32 %v257_v18, %v258_v19 }
  0xf9   :  { %v260_v21 = vmax.f32 %v259_v20, 0.0 }
  0xfb   :  { %v261_v22 = vadd.f32 1e-05, %v260_v21 }
  0xfd   :  { %1073 = vrsqrt.f32 %v261_v22 }
 0x10a   :  { %v1074_v23 = vpop.eup %1073 }
 0x10b   :  { %v263_v24 = vmul.f32 %v1074_v23, %v1165_v29 }
 0x10d   :  { %v264_v26 = vmul.f32 %v263_v24, %v235_v16  ;;  %v272_v31 = vrot.slane %v263_v24, %v271_v25 }
 0x10f   :  { %v266_v30 = vrot.slane %v264_v26, 7  ;;  %v273_v37 = vmul.f32 %v272_v31, %v1172_v34  ;;  %v274_v38 = vmul.f32 %v272_v31, %v1170_v33  ;;  %v275_v39 = vmul.f32 %v272_v31, %v194_v41 }
 0x110   :  { %v276_v45 = vmul.f32 %v272_v31, %v1180_v40  ;;  %v277_v49 = vmul.f32 %v272_v31, %v204_v50  ;;  %v278_v54 = vmul.f32 %v272_v31, %v1182_v46  ;;  %v279_v55 = vmul.f32 %v272_v31, %v214_v60  ;;  %v70_v46 = vld [vmem:[#allocation2 + $0x100] sm:$0xff]  ;;  %v69_v60 = vld [vmem:[#allocation2 + $0xf8] sm:$0xff] }
 0x111   :  { %v268_v35 = vsub.f32 %v1165_v29, %v266_v30  ;;  %v280_v57 = vmul.f32 %v272_v31, %v219_v59  ;;  %952 = vmatprep.subr.mxu0 %v70_v46  ;;  %v67_v59 = vld [vmem:[#allocation2 + $0xe8] sm:$0xff] }
 0x112   :  { %953 = vmatpush3.msra.mxu0 %v70_v46 }
 0x113   :  { %v284_v36 = vrot.slane %v268_v35, %v283_v32  ;;  %954 = vmatprep.subr.mxu0 %v69_v60 }
 0x114   :  { %955 = vmatpush3.msra.mxu0 %v69_v60 }
 0x115   :  { %v285_v42 = vadd.f32 %v284_v36, %v273_v37  ;;  %v286_v43 = vadd.f32 %v284_v36, %v274_v38  ;;  %v287_v44 = vadd.f32 %v284_v36, %v275_v39  ;;  %v288_v51 = vadd.f32 %v284_v36, %v276_v45  ;;  %956 = vmatprep.subr.mxu0 %v68_v63 }
 0x116   :  { %v289_v53 = vadd.f32 %v284_v36, %v277_v49  ;;  %v290_v33 = vadd.f32 %v284_v36, %v278_v54  ;;  %v291_v56 = vadd.f32 %v284_v36, %v279_v55  ;;  %v292_v58 = vadd.f32 %v284_v36, %v280_v57  ;;  %957 = vmatpush3.msra.mxu0 %v68_v63 }
 0x117   :  { %v293_v47 = vmax.f32 %v285_v42, 0.0  ;;  %v294_v48 = vmax.f32 %v286_v43, 0.0  ;;  %v295_v52 = vmax.f32 %v287_v44, 0.0  ;;  %v296_v34 = vmax.f32 %v288_v51, 0.0  ;;  %958 = vmatprep.subr.mxu0 %v67_v59 }
 0x118   :  { %v297_v41 = vmax.f32 %v289_v53, 0.0  ;;  %v298_v40 = vmax.f32 %v290_v33, 0.0  ;;  %v299_v61 = vmax.f32 %v291_v56, 0.0  ;;  %v300_v50 = vmax.f32 %v292_v58, 0.0  ;;  %959 = vmatpush3.msra.mxu0 %v67_v59 }
 0x119   :  { %938 = vmatprep.mubr.f32.mxu1 %v293_v47  ;;  %960 = vmatprep.subr.mxu0 %v66_v0 }
 0x11a   :  { %939 = vmatmul.mubr.f32.vlgmr.msra.gmra.mxu1 %v294_v48  ;;  %961 = vmatpush3.msra.mxu0 %v66_v0 }
 0x11b   :  { %941 = vmatprep.mubr.f32.mxu1 %v295_v52  ;;  %962 = vmatprep.subr.mxu0 %v65_v1 }
 0x11c   :  { %963 = vmatpush3.msra.mxu0 %v65_v1 }
 0x11d   :  { %964 = vmatprep.subr.mxu0 %v64_v2 }
 0x11e   :  { %942 = vmatmul.mubr.f32.gmra.mxu1 %v296_v34  ;;  %965 = vmatpush3.msra.mxu0 %v64_v2 }
 0x11f   :  { %944 = vmatprep.mubr.f32.mxu1 %v297_v41  ;;  %966 = vmatprep.subr.mxu0 %v63_v3 }
 0x120   :  { %967 = vmatpush3.msra.mxu0 %v63_v3 }
 0x121   :  { %968 = vmatprep.subr.mxu0 %v62_v4 }
 0x122   :  { %945 = vmatmul.mubr.f32.gmra.mxu1 %v298_v40  ;;  %969 = vmatpush3.msra.mxu0 %v62_v4 }
 0x123   :  { %947 = vmatprep.mubr.f32.mxu1 %v299_v61  ;;  %970 = vmatprep.subr.mxu0 %v61_v5 }
 0x124   :  { %971 = vmatpush3.msra.mxu0 %v61_v5 }
 0x125   :  { %972 = vmatprep.subr.mxu0 %v60_v6 }
 0x126   :  { %948 = vmatmul.mubr.f32.gmra.mxu1 %v300_v50  ;;  %973 = vmatpush3.msra.mxu0 %v60_v6 }
 0x127   :  { %974 = vmatprep.subr.mxu0 %v59_v7 }
 0x128   :  { %975 = vmatpush3.msra.mxu0 %v59_v7 }
 0x129   :  { %976 = vmatprep.subr.mxu0 %v58_v8 }
 0x12a   :  { %977 = vmatpush3.msra.mxu0 %v58_v8 }
 0x12b   :  { %978 = vmatprep.subr.mxu0 %v57_v9 }
 0x12c   :  { %979 = vmatpush3.msra.mxu0 %v57_v9 }
 0x12d   :  { %980 = vmatprep.subr.mxu0 %v56_v10 }
 0x12e   :  { %981 = vmatpush3.msra.mxu0 %v56_v10 }
 0x1da   :  { %v940_v13 = vpop.f32.mrf.mxu1 }
 0x1db   :  { %v1202_v15 = vadd.f32 %v940_v13, %v304_v12 }
 0x1dc   :  { %v371_v14 = vpop.f32.mrf.mxu1 }
 0x1dd   :  { %v1204_v16 = vadd.f32 %v371_v14, %v304_v12  ;;  %v425_v20 = vmul.f32 %v1202_v15, %v1202_v15 }
 0x1de   :  { %v943_v17 = vpop.f32.mrf.mxu1 }
 0x1df   :  { %v424_v18 = vmul.f32 %v1204_v16, %v1204_v16  ;;  %v410_v21 = vadd.f32 %v1202_v15, %v1204_v16  ;;  %v1212_v22 = vadd.f32 %v943_v17, %v304_v12  ;;  %v471_v17 = vsub.s32 5, %v1159_v27 }
 0x1e0   :  { %v381_v19 = vpop.f32.mrf.mxu1 }
 0x1e1   :  { %v382_v23 = vadd.f32 %v381_v19, %v304_v12  ;;  %v432_v26 = vadd.f32 %v425_v20, %v424_v18  ;;  %v427_v36 = vmul.f32 %v1212_v22, %v1212_v22 }
 0x1e2   :  { %v946_v24 = vpop.f32.mrf.mxu1 }
 0x1e3   :  { %v411_v30 = vadd.f32 %v410_v21, %v382_v23  ;;  %v426_v31 = vmul.f32 %v382_v23, %v382_v23  ;;  %v1214_v32 = vadd.f32 %v946_v24, %v304_v12 }
 0x1e4   :  { %v391_v35 = vpop.f32.mrf.mxu1 }
 0x1e5   :  { %v433_v37 = vadd.f32 %v432_v26, %v426_v31  ;;  %v392_v38 = vadd.f32 %v391_v35, %v304_v12  ;;  %v412_v39 = vadd.f32 %v411_v30, %v1212_v22  ;;  %v429_v47 = vmul.f32 %v1214_v32, %v1214_v32 }
 0x1e6   :  { %v949_v42 = vpop.f32.mrf.mxu1 }
 0x1e7   :  { %v413_v43 = vadd.f32 %v412_v39, %v392_v38  ;;  %v428_v44 = vmul.f32 %v392_v38, %v392_v38  ;;  %v434_v45 = vadd.f32 %v433_v37, %v427_v36  ;;  %v407_v51 = vadd.f32 %v949_v42, %v304_v12 }
 0x1e8   :  { %v401_v48 = vpop.f32.mrf.mxu1 }
 0x1e9   :  { %v435_v49 = vadd.f32 %v434_v45, %v428_v44  ;;  %v402_v52 = vadd.f32 %v401_v48, %v304_v12  ;;  %v414_v53 = vadd.f32 %v413_v43, %v1214_v32  ;;  %v431_v33 = vmul.f32 %v407_v51, %v407_v51 }
 0x1eb   :  { %v415_v54 = vadd.f32 %v414_v53, %v402_v52  ;;  %v430_v55 = vmul.f32 %v402_v52, %v402_v52  ;;  %v436_v34 = vadd.f32 %v435_v49, %v429_v47 }
 0x1ed   :  { %v416_v41 = vadd.f32 %v415_v54, %v407_v51  ;;  %v437_v56 = vadd.f32 %v436_v34, %v430_v55  ;;  %v87_v55 = vld [vmem:[#allocation2 + $0x188] sm:$0xff] }
 0x1ee   :  { %994 = vmatprep.subr.mxu0 %v87_v55  ;;  %1038 = vmatprep.subr.mxu1 %v87_v55  ;;  %v83_v34 = vld [vmem:[#allocation2 + $0x168] sm:$0xff] }
 0x1ef   :  { %v417_v57 = vrot.slane %v416_v41, 4  ;;  %v438_v40 = vadd.f32 %v437_v56, %v431_v33  ;;  %1054 = vmatpush3.msra.mxu1 %v87_v55  ;;  %v82_v33 = vld [vmem:[#allocation2 + $0x160] sm:$0xff]  ;;  %v80_v56 = vld [vmem:[#allocation2 + $0x150] sm:$0xff] }
 0x1f1   :  { %v418_v58 = vadd.f32 %v417_v57, %v416_v41  ;;  %v439_v61 = vrot.slane %v438_v40, 4  ;;  %v81_v41 = vld [vmem:[#allocation2 + $0x158] sm:$0xff]  ;;  %v79_v57 = vld [vmem:[#allocation2 + $0x148] sm:$0xff] }
 0x1f3   :  { %v419_v50 = vrot.slane %v418_v58, 2  ;;  %v440_v62 = vadd.f32 %v439_v61, %v438_v40  ;;  %v78_v40 = vld [vmem:[#allocation2 + $0x140] sm:$0xff]  ;;  %v76_v61 = vld [vmem:[#allocation2 + $0x130] sm:$0xff] }
 0x1f5   :  { %v420_v46 = vadd.f32 %v419_v50, %v418_v58  ;;  %v441_v60 = vrot.slane %v440_v62, 2  ;;  %v77_v58 = vld [vmem:[#allocation2 + $0x138] sm:$0xff]  ;;  %v75_v50 = vld [vmem:[#allocation2 + $0x128] sm:$0xff] }
 0x1f7   :  { %v421_v63 = vrot.slane %v420_v46, 1  ;;  %v442_v59 = vadd.f32 %v441_v60, %v440_v62  ;;  %v74_v62 = vld [vmem:[#allocation2 + $0x120] sm:$0xff]  ;;  %v72_v60 = vld [vmem:[#allocation2 + $0x110] sm:$0xff] }
 0x1f9   :  { %v422_v0 = vadd.f32 %v421_v63, %v420_v46  ;;  %v443_v1 = vrot.slane %v442_v59, 1  ;;  %v73_v46 = vld [vmem:[#allocation2 + $0x118] sm:$0xff]  ;;  %v491_v63 = vsub.s32 6, %v1159_v27 }
 0x1fb   :  { %v423_v2 = vmul.f32 0.015625, %v422_v0  ;;  %v444_v3 = vadd.f32 %v443_v1, %v442_v59  ;;  %v492_v59 = vrot.slane %v1165_v29, %v491_v63 }
 0x1fd   :  { %v445_v4 = vmul.f32 0.015625, %v444_v3  ;;  %v446_v5 = vmul.f32 %v423_v2, %v423_v2 }
 0x1ff   :  { %v447_v6 = vsub.f32 %v445_v4, %v446_v5 }
 0x201   :  { %v448_v7 = vmax.f32 %v447_v6, 0.0 }
 0x203   :  { %v449_v8 = vadd.f32 1e-05, %v448_v7 }
 0x205   :  { %1075 = vrsqrt.f32 %v449_v8 }
 0x212   :  { %v1076_v9 = vpop.eup %1075 }
 0x213   :  { %v451_v10 = vmul.f32 %v1076_v9, %v1165_v29 }
 0x215   :  { %v452_v12 = vmul.f32 %v451_v10, %v423_v2  ;;  %v460_v14 = vrot.slane %v451_v10, %v459_v11 }
 0x217   :  { %v454_v13 = vrot.slane %v452_v12, 7  ;;  %v461_v20 = vmul.f32 %v460_v14, %v1204_v16  ;;  %v462_v21 = vmul.f32 %v460_v14, %v1202_v15  ;;  %v463_v24 = vmul.f32 %v460_v14, %v382_v23 }
 0x218   :  { %v464_v35 = vmul.f32 %v460_v14, %v1212_v22  ;;  %v465_v39 = vmul.f32 %v460_v14, %v392_v38  ;;  %v466_v45 = vmul.f32 %v460_v14, %v1214_v32  ;;  %v467_v47 = vmul.f32 %v460_v14, %v402_v52  ;;  %v86_v32 = vld [vmem:[#allocation2 + $0x180] sm:$0xff]  ;;  %v85_v52 = vld [vmem:[#allocation2 + $0x178] sm:$0xff] }
 0x219   :  { %v456_v18 = vsub.f32 %v1165_v29, %v454_v13  ;;  %v468_v49 = vmul.f32 %v460_v14, %v407_v51  ;;  %1039 = vmatprep.subr.mxu1 %v86_v32  ;;  %v84_v51 = vld [vmem:[#allocation2 + $0x170] sm:$0xff] }
 0x21a   :  { %1055 = vmatpush3.msra.mxu1 %v86_v32 }
 0x21b   :  { %v472_v19 = vrot.slane %v456_v18, %v471_v17  ;;  %1040 = vmatprep.subr.mxu1 %v85_v52 }
 0x21c   :  { %1056 = vmatpush3.msra.mxu1 %v85_v52 }
 0x21d   :  { %v473_v26 = vadd.f32 %v472_v19, %v461_v20  ;;  %v474_v30 = vadd.f32 %v472_v19, %v462_v21  ;;  %v475_v31 = vadd.f32 %v472_v19, %v463_v24  ;;  %v476_v42 = vadd.f32 %v472_v19, %v464_v35  ;;  %1041 = vmatprep.subr.mxu1 %v84_v51 }
 0x21e   :  { %v477_v44 = vadd.f32 %v472_v19, %v465_v39  ;;  %v478_v15 = vadd.f32 %v472_v19, %v466_v45  ;;  %v479_v48 = vadd.f32 %v472_v19, %v467_v47  ;;  %v480_v53 = vadd.f32 %v472_v19, %v468_v49  ;;  %1057 = vmatpush3.msra.mxu1 %v84_v51 }
 0x21f   :  { %v481_v36 = vmax.f32 %v473_v26, 0.0  ;;  %v482_v37 = vmax.f32 %v474_v30, 0.0  ;;  %v483_v43 = vmax.f32 %v475_v31, 0.0  ;;  %v484_v16 = vmax.f32 %v476_v42, 0.0  ;;  %1042 = vmatprep.subr.mxu1 %v83_v34 }
 0x220   :  { %v485_v23 = vmax.f32 %v477_v44, 0.0  ;;  %v486_v22 = vmax.f32 %v478_v15, 0.0  ;;  %v487_v54 = vmax.f32 %v479_v48, 0.0  ;;  %v488_v38 = vmax.f32 %v480_v53, 0.0  ;;  %1058 = vmatpush3.msra.mxu1 %v83_v34 }
 0x221   :  { %982 = vmatprep.mubr.f32.mxu0 %v481_v36  ;;  %1043 = vmatprep.subr.mxu1 %v82_v33 }
 0x222   :  { %983 = vmatmul.mubr.f32.vlgmr.msra.gmra.mxu0 %v482_v37  ;;  %1059 = vmatpush3.msra.mxu1 %v82_v33 }
 0x223   :  { %985 = vmatprep.mubr.f32.mxu0 %v483_v43  ;;  %995 = vmatpush3.msra.mxu0 %v87_v55 }
 0x224   :  { %996 = vmatprep.subr.mxu0 %v86_v32  ;;  %1044 = vmatprep.subr.mxu1 %v81_v41 }
 0x225   :  { %997 = vmatpush3.msra.mxu0 %v86_v32  ;;  %1060 = vmatpush3.msra.mxu1 %v81_v41 }
 0x226   :  { %986 = vmatmul.mubr.f32.gmra.mxu0 %v484_v16  ;;  %998 = vmatprep.subr.mxu0 %v85_v52 }
 0x227   :  { %988 = vmatprep.mubr.f32.mxu0 %v485_v23  ;;  %999 = vmatpush3.msra.mxu0 %v85_v52 }
 0x228   :  { %1000 = vmatprep.subr.mxu0 %v84_v51  ;;  %1045 = vmatprep.subr.mxu1 %v80_v56 }
 0x229   :  { %1001 = vmatpush3.msra.mxu0 %v84_v51  ;;  %1061 = vmatpush3.msra.mxu1 %v80_v56 }
 0x22a   :  { %989 = vmatmul.mubr.f32.gmra.mxu0 %v486_v22  ;;  %1002 = vmatprep.subr.mxu0 %v83_v34 }
 0x22b   :  { %991 = vmatprep.mubr.f32.mxu0 %v487_v54  ;;  %1003 = vmatpush3.msra.mxu0 %v83_v34 }
 0x22c   :  { %1004 = vmatprep.subr.mxu0 %v82_v33  ;;  %1046 = vmatprep.subr.mxu1 %v79_v57 }
 0x22d   :  { %1005 = vmatpush3.msra.mxu0 %v82_v33  ;;  %1062 = vmatpush3.msra.mxu1 %v79_v57 }
 0x22e   :  { %992 = vmatmul.mubr.f32.gmra.mxu0 %v488_v38  ;;  %1006 = vmatprep.subr.mxu0 %v81_v41 }
 0x22f   :  { %1007 = vmatpush3.msra.mxu0 %v81_v41  ;;  %1047 = vmatprep.subr.mxu1 %v78_v40 }
 0x230   :  { %1008 = vmatprep.subr.mxu0 %v80_v56  ;;  %1063 = vmatpush3.msra.mxu1 %v78_v40 }
 0x231   :  { %1009 = vmatpush3.msra.mxu0 %v80_v56  ;;  %1048 = vmatprep.subr.mxu1 %v77_v58 }
 0x232   :  { %1010 = vmatprep.subr.mxu0 %v79_v57  ;;  %1064 = vmatpush3.msra.mxu1 %v77_v58 }
 0x233   :  { %1011 = vmatpush3.msra.mxu0 %v79_v57  ;;  %1049 = vmatprep.subr.mxu1 %v76_v61 }
 0x234   :  { %1012 = vmatprep.subr.mxu0 %v78_v40  ;;  %1065 = vmatpush3.msra.mxu1 %v76_v61 }
 0x235   :  { %1013 = vmatpush3.msra.mxu0 %v78_v40  ;;  %1050 = vmatprep.subr.mxu1 %v75_v50 }
 0x236   :  { %1014 = vmatprep.subr.mxu0 %v77_v58  ;;  %1066 = vmatpush3.msra.mxu1 %v75_v50 }
 0x237   :  { %1015 = vmatpush3.msra.mxu0 %v77_v58  ;;  %1051 = vmatprep.subr.mxu1 %v74_v62 }
 0x238   :  { %1016 = vmatprep.subr.mxu0 %v76_v61  ;;  %1067 = vmatpush3.msra.mxu1 %v74_v62 }
 0x239   :  { %1017 = vmatpush3.msra.mxu0 %v76_v61  ;;  %1052 = vmatprep.subr.mxu1 %v73_v46 }
 0x23a   :  { %1018 = vmatprep.subr.mxu0 %v75_v50  ;;  %1068 = vmatpush3.msra.mxu1 %v73_v46 }
 0x23b   :  { %1019 = vmatpush3.msra.mxu0 %v75_v50  ;;  %1053 = vmatprep.subr.mxu1 %v72_v60 }
 0x23c   :  { %1020 = vmatprep.subr.mxu0 %v74_v62  ;;  %1069 = vmatpush3.msra.mxu1 %v72_v60 }
 0x23d   :  { %1021 = vmatpush3.msra.mxu0 %v74_v62 }
 0x23e   :  { %1022 = vmatprep.subr.mxu0 %v73_v46 }
 0x23f   :  { %1023 = vmatpush3.msra.mxu0 %v73_v46 }
 0x240   :  { %1024 = vmatprep.subr.mxu0 %v72_v60 }
 0x241   :  { %1025 = vmatpush3.msra.mxu0 %v72_v60  ;;  %v647_v60 = vsub.s32 7, %v1159_v27 }
 0x2e2   :  { %v984_v0 = vpop.f32.mrf.mxu0 }
 0x2e3   :  { %v1232_v2 = vadd.f32 %v984_v0, %v492_v59  ;;  %v37_v0 = vld [vmem:[%s1281_s2 + $0x8] sm:$0xff] }
 0x2e4   :  { %v559_v1 = vpop.f32.mrf.mxu0 }
 0x2e5   :  { %v560_v3 = vadd.f32 %v559_v1, %v492_v59  ;;  %v613_v7 = vmul.f32 %v1232_v2, %v1232_v2 }
 0x2e6   :  { %v987_v4 = vpop.f32.mrf.mxu0 }
 0x2e7   :  { %v612_v5 = vmul.f32 %v560_v3, %v560_v3  ;;  %v598_v8 = vadd.f32 %v1232_v2, %v560_v3  ;;  %v575_v9 = vadd.f32 %v987_v4, %v492_v59 }
 0x2e8   :  { %v569_v6 = vpop.f32.mrf.mxu0 }
 0x2e9   :  { %v570_v10 = vadd.f32 %v569_v6, %v492_v59  ;;  %v620_v12 = vadd.f32 %v613_v7, %v612_v5  ;;  %v615_v19 = vmul.f32 %v575_v9, %v575_v9 }
 0x2ea   :  { %v990_v11 = vpop.f32.mrf.mxu0 }
 0x2eb   :  { %v599_v13 = vadd.f32 %v598_v8, %v570_v10  ;;  %v614_v14 = vmul.f32 %v570_v10, %v570_v10  ;;  %v585_v17 = vadd.f32 %v990_v11, %v492_v59 }
 0x2ec   :  { %v579_v18 = vpop.f32.mrf.mxu0 }
 0x2ed   :  { %v621_v20 = vadd.f32 %v620_v12, %v614_v14  ;;  %v580_v21 = vadd.f32 %v579_v18, %v492_v59  ;;  %v600_v24 = vadd.f32 %v599_v13, %v575_v9  ;;  %v617_v36 = vmul.f32 %v585_v17, %v585_v17 }
 0x2ee   :  { %v993_v26 = vpop.f32.mrf.mxu0 }
 0x2ef   :  { %v601_v30 = vadd.f32 %v600_v24, %v580_v21  ;;  %v616_v31 = vmul.f32 %v580_v21, %v580_v21  ;;  %v622_v35 = vadd.f32 %v621_v20, %v615_v19  ;;  %v595_v42 = vadd.f32 %v993_v26, %v492_v59 }
 0x2f0   :  { %v589_v37 = vpop.f32.mrf.mxu0 }
 0x2f1   :  { %v623_v39 = vadd.f32 %v622_v35, %v616_v31  ;;  %v590_v43 = vadd.f32 %v589_v37, %v492_v59  ;;  %v602_v44 = vadd.f32 %v601_v30, %v585_v17  ;;  %v619_v15 = vmul.f32 %v595_v42, %v595_v42 }
 0x2f3   :  { %v603_v45 = vadd.f32 %v602_v44, %v590_v43  ;;  %v618_v47 = vmul.f32 %v590_v43, %v590_v43  ;;  %v624_v16 = vadd.f32 %v623_v39, %v617_v36 }
 0x2f5   :  { %v604_v23 = vadd.f32 %v603_v45, %v595_v42  ;;  %v625_v48 = vadd.f32 %v624_v16, %v618_v47 }
 0x2f7   :  { %v605_v49 = vrot.slane %v604_v23, 4  ;;  %v626_v22 = vadd.f32 %v625_v48, %v619_v15 }
 0x2f9   :  { %v606_v53 = vadd.f32 %v605_v49, %v604_v23  ;;  %v627_v54 = vrot.slane %v626_v22, 4 }
 0x2fb   :  { %v607_v38 = vrot.slane %v606_v53, 2  ;;  %v628_v55 = vadd.f32 %v627_v54, %v626_v22 }
 0x2fd   :  { %v608_v32 = vadd.f32 %v607_v38, %v606_v53  ;;  %v629_v52 = vrot.slane %v628_v55, 2 }
 0x2ff   :  { %v609_v51 = vrot.slane %v608_v32, 1  ;;  %v630_v34 = vadd.f32 %v629_v52, %v628_v55 }
 0x301   :  { %v610_v33 = vadd.f32 %v609_v51, %v608_v32  ;;  %v631_v41 = vrot.slane %v630_v34, 1 }
 0x303   :  { %v611_v56 = vmul.f32 0.015625, %v610_v33  ;;  %v632_v57 = vadd.f32 %v631_v41, %v630_v34 }
 0x305   :  { %v633_v40 = vmul.f32 0.015625, %v632_v57  ;;  %v634_v58 = vmul.f32 %v611_v56, %v611_v56 }
 0x307   :  { %v635_v61 = vsub.f32 %v633_v40, %v634_v58 }
 0x309   :  { %v636_v50 = vmax.f32 %v635_v61, 0.0 }
 0x30b   :  { %v637_v62 = vadd.f32 1e-05, %v636_v50 }
 0x30d   :  { %1077 = vrsqrt.f32 %v637_v62 }
 0x31a   :  { %v1078_v46 = vpop.eup %1077 }
 0x31b   :  { %v639_v63 = vmul.f32 %v1078_v46, %v1165_v29 }
 0x31d   :  { %v640_v59 = vmul.f32 %v639_v63, %v611_v56  ;;  %v648_v1 = vrot.slane %v639_v63, %v647_v60 }
 0x31f   :  { %v642_v4 = vrot.slane %v640_v59, 7  ;;  %v649_v6 = vmul.f32 %v648_v1, %v560_v3  ;;  %v651_v8 = vmul.f32 %v648_v1, %v570_v10  ;;  %v650_v11 = vmul.f32 %v648_v1, %v1232_v2 }
 0x320   :  { %v652_v12 = vmul.f32 %v648_v1, %v575_v9  ;;  %v653_v13 = vmul.f32 %v648_v1, %v580_v21  ;;  %v655_v20 = vmul.f32 %v648_v1, %v590_v43  ;;  %v654_v26 = vmul.f32 %v648_v1, %v585_v17 }
 0x321   :  { %v644_v5 = vsub.f32 %v37_v0, %v642_v4  ;;  %v656_v2 = vmul.f32 %v648_v1, %v595_v42  ;;  %v680_v17 = vrot.slane %v37_v0, %v271_v25 }
 0x323   :  { %v660_v7 = vrot.slane %v644_v5, %v90_v28 }
 0x325   :  { %v661_v14 = vadd.f32 %v660_v7, %v649_v6  ;;  %v663_v18 = vadd.f32 %v660_v7, %v651_v8  ;;  %v662_v29 = vadd.f32 %v660_v7, %v650_v11  ;;  %v664_v19 = vadd.f32 %v660_v7, %v652_v12 }
 0x326   :  { %v665_v24 = vadd.f32 %v660_v7, %v653_v13  ;;  %v666_v3 = vadd.f32 %v660_v7, %v654_v26  ;;  %v667_v10 = vadd.f32 %v660_v7, %v655_v20  ;;  %v668_v21 = vadd.f32 %v660_v7, %v656_v2 }
 0x327   :  { %v669_v30 = vmax.f32 %v661_v14, 0.0  ;;  %v671_v31 = vmax.f32 %v663_v18, 0.0  ;;  %v670_v35 = vmax.f32 %v662_v29, 0.0  ;;  %v672_v36 = vmax.f32 %v664_v19, 0.0 }
 0x328   :  { %v673_v28 = vmax.f32 %v665_v24, 0.0  ;;  %v674_v9 = vmax.f32 %v666_v3, 0.0  ;;  %v675_v37 = vmax.f32 %v667_v10, 0.0  ;;  %v676_v39 = vmax.f32 %v668_v21, 0.0 }
 0x329   :  { %1026 = vmatprep.mubr.f32.mxu0 %v669_v30  ;;  %1029 = vmatprep.mubr.f32.mxu1 %v671_v31 }
 0x32a   :  { %1027 = vmatmul.mubr.f32.vlgmr.msra.gmra.mxu0 %v670_v35  ;;  %1030 = vmatmul.mubr.f32.vlgmr.msra.gmra.mxu1 %v672_v36 }
 0x32b   :  { %1032 = vmatprep.mubr.f32.mxu1 %v673_v28 }
 0x32e   :  { %1033 = vmatmul.mubr.f32.gmra.mxu1 %v674_v9 }
 0x32f   :  { %1035 = vmatprep.mubr.f32.mxu1 %v675_v37 }
 0x332   :  { %1036 = vmatmul.mubr.f32.gmra.mxu1 %v676_v39 }
 0x3ea   :  { %v1028_v43 = vpop.f32.mrf.mxu0  ;;  %v1031_v44 = vpop.f32.mrf.mxu1 }
 0x3eb   :  { %v753_v45 = vadd.f32 %v1028_v43, %v680_v17  ;;  %v763_v47 = vadd.f32 %v1031_v44, %v680_v17 }
 0x3ec   :  { %v747_v16 = vpop.f32.mrf.mxu0  ;;  %v757_v15 = vpop.f32.mrf.mxu1 }
 0x3ed   :  { %788 = vst.msk [vmem:[%s1282_s3 + $0x8] sm:$0xff] %vm786_vm1, %v753_v45  ;;  %790 = vst.msk [vmem:[%s1282_s3 + $0x18] sm:$0xff] %vm786_vm1, %v763_v47  ;;  %v748_v42 = vadd.f32 %v747_v16, %v680_v17  ;;  %v758_v27 = vadd.f32 %v757_v15, %v680_v17 }
 0x3ee   :  { %v1034_v25 = vpop.f32.mrf.mxu1 }
 0x3ef   :  { %787 = vst.msk [vmem:[%s1282_s3] sm:$0xff] %vm786_vm1, %v748_v42  ;;  %789 = vst.msk [vmem:[%s1282_s3 + $0x10] sm:$0xff] %vm786_vm1, %v758_v27  ;;  %v773_v23 = vadd.f32 %v1034_v25, %v680_v17 }
 0x3f0   :  { %v767_v48 = vpop.f32.mrf.mxu1 }
 0x3f1   :  { %792 = vst.msk [vmem:[%s1282_s3 + $0x28] sm:$0xff] %vm786_vm1, %v773_v23  ;;  %v768_v49 = vadd.f32 %v767_v48, %v680_v17 }
 0x3f2   :  { %v1037_v22 = vpop.f32.mrf.mxu1 }
 0x3f3   :  { %791 = vst.msk [vmem:[%s1282_s3 + $0x20] sm:$0xff] %vm786_vm1, %v768_v49  ;;  %v783_v53 = vadd.f32 %v1037_v22, %v680_v17 }
 0x3f4   :  { %v777_v54 = vpop.f32.mrf.mxu1 }
 0x3f5   :  { %794 = vst.msk [vmem:[%s1282_s3 + $0x38] sm:$0xff] %vm786_vm1, %v783_v53  ;;  %v778_v38 = vadd.f32 %v777_v54, %v680_v17 }
 0x3f7   :  { %793 = vst.msk [vmem:[%s1282_s3 + $0x30] sm:$0xff] %vm786_vm1, %v778_v38 }
 0x3f8   :  { %799 = vsyncpa [#allocation3], 1 }

</bundles_post_ra>
